<compile_context>
chip_gen: v7x
topology: tpu7x:2x2x1
jax: 0.10.0
libtpu: 0.0.40
codegen_flags: <defaults>
</compile_context>

<pallas_src>
import math

import jax
import jax.numpy as jnp
from jax.experimental import pallas as pl
from jax.experimental.pallas import tpu as pltpu


def _round_up(x: int, m: int) -> int:
    return ((x + m - 1) // m) * m


def _apply_scaling(freqs, factor=8, low_freq_factor=1, high_freq_factor=4,
                   original_max_position_embeddings=8192):
    """Llama-3 style rope scaling. Host-side precompute on a [dim//2] vector."""
    old_context_len = original_max_position_embeddings
    low_freq_wavelen = old_context_len / low_freq_factor
    high_freq_wavelen = old_context_len / high_freq_factor
    wavelen = 2 * math.pi / freqs
    inv_freq_llama = jnp.where(wavelen > low_freq_wavelen, freqs / factor, freqs)
    smooth_factor = (old_context_len / wavelen - low_freq_factor) / (
        high_freq_factor - low_freq_factor)
    smoothed_inv_freq = (1 - smooth_factor) * inv_freq_llama / factor \
        + smooth_factor * inv_freq_llama
    is_medium_freq = (~(wavelen < high_freq_wavelen)) & (~(wavelen > low_freq_wavelen))
    return jnp.where(is_medium_freq, smoothed_inv_freq, inv_freq_llama)


def rotary_embedding_forward(inv_freq, max_seq_len, offset=0,
                             seq_len_interpolation_factor=None,
                             tile_bytes_target=2 << 20):
    """Pallas implementation of RotaryEmbedding.forward.

    inv_freq: f32[dim//2]. Returns f32[max_seq_len, 1, 1, dim].
    """
    dim_half = inv_freq.shape[0]
    dim = 2 * dim_half

    # Megatron half-split layout emb = concat(freqs, freqs): do the concat once on the
    # host on the tiny [dim//2] vector -> the kernel never concatenates.
    inv_freq_full = jnp.concatenate(
        [inv_freq.astype(jnp.float32), inv_freq.astype(jnp.float32)])  # [dim]

    # Lane packing: make the store width a multiple of 128 lanes for ANY dim.
    # pack consecutive seq rows share one store row; reshape back is a pure view.
    if dim % 128 == 0:
        pack = 1
    else:
        pack = 128 // math.gcd(dim, 128)
    width = pack * dim
    inv_freq_row = jnp.tile(inv_freq_full, pack).reshape(1, width)   # [1, width]

    rows_total = -(-max_seq_len // pack)                              # cdiv
    # Tile rows from a VMEM byte budget (per output buffer), 8-aligned, >= 8.
    budget_rows = max(8, (tile_bytes_target // (width * 4)) // 8 * 8)
    tile_rows = min(budget_rows, _round_up(rows_total, 8))
    rows_pad = _round_up(rows_total, tile_rows)
    grid = (rows_pad // tile_rows,)

    offset_arr = jnp.asarray([offset], dtype=jnp.int32)               # SMEM prefetch
    inv_factor = (None if seq_len_interpolation_factor is None
                  else float(1.0 / seq_len_interpolation_factor))

    def kernel(offset_ref, inv_freq_ref, out_ref):
        pid = pl.program_id(0)
        # Integer seq index for this tile (matches reference: int arange+offset, then
        # cast to f32, then optional *1/f, then * inv_freq).
        base = pid * (tile_rows * pack) + offset_ref[0]               # scalar i32
        row_idx = jax.lax.broadcasted_iota(jnp.int32, (tile_rows, 1), 0) * pack
        pos_i = row_idx + base                                        # [tile_rows, 1]
        if pack > 1:
            lane_idx = jax.lax.broadcasted_iota(jnp.int32, (1, width), 1) // dim
            pos_i = pos_i + lane_idx                                  # [tile_rows, width]
        pos = pos_i.astype(jnp.float32)
        if inv_factor is not None:
            pos = pos * jnp.float32(inv_factor)
        # VPU broadcast multiply == outer(seq, inv_freq), duplicated over both halves.
        out_ref[...] = pos * inv_freq_ref[...]

    out2d = pl.pallas_call(
        kernel,
        out_shape=jax.ShapeDtypeStruct((rows_pad, width), jnp.float32),
        grid_spec=pltpu.PrefetchScalarGridSpec(
            num_scalar_prefetch=1,
            grid=grid,
            in_specs=[
                # inv_freq row: constant block index -> stays resident, one tiny DMA.
                pl.BlockSpec((1, width), lambda i, off: (0, 0)),
            ],
            out_specs=pl.BlockSpec((tile_rows, width), lambda i, off: (i, 0)),
        ),
        compiler_params=pltpu.CompilerParams(
            dimension_semantics=("parallel",),   # shard seq axis across v7x TCs
        ),
    )(offset_arr, inv_freq_row)

    # (rows_pad, pack*dim) has the same row-major bytes as (rows_pad*pack, dim).
    emb = out2d.reshape(rows_pad * pack, dim)[:max_seq_len]
    return emb[:, None, None, :]                 # [S, 1, 1, dim]


class RotaryEmbedding:
    """JAX/Pallas port of megatron RotaryEmbedding (forward only)."""

    def __init__(self, dim, theta, rope_scaling: bool = False,
                 seq_len_interpolation_factor=None):
        self.dim = dim
        self.theta = theta
        self.seq_len_interpolation_factor = seq_len_interpolation_factor
        inv_freq = 1.0 / (theta ** (jnp.arange(0, dim, 2, dtype=jnp.float32) / dim))
        if rope_scaling:
            inv_freq = _apply_scaling(inv_freq)   # host-side precompute
        self.inv_freq = inv_freq                  # f32[dim//2]

    def __call__(self, max_seq_len, offset=0):
        return rotary_embedding_forward(
            self.inv_freq, max_seq_len, offset,
            self.seq_len_interpolation_factor)


def _reference(inv_freq, max_seq_len, offset, factor):
    seq = (jnp.arange(max_seq_len, dtype=jnp.int32) + offset).astype(jnp.float32)
    if factor is not None:
        seq = seq * jnp.float32(1.0 / factor)
    freqs = seq[:, None] * inv_freq[None, :]
    return jnp.concatenate([freqs, freqs], axis=-1)[:, None, None, :]


if __name__ == "__main__":
    # Inputs are fully deterministic (derived from theta / arange); key kept for form.
    _ = jax.random.PRNGKey(0)
    theta = 10000.0

    # Config 1: dim=128 (natively lane-dense), offset + seq-len interpolation.
    rope = RotaryEmbedding(128, theta, seq_len_interpolation_factor=4.0)
    out = jax.block_until_ready(rope(256, offset=3))
    ref = _reference(rope.inv_freq, 256, 3, 4.0)
    assert out.shape == (256, 1, 1, 128)
    assert jnp.allclose(out, ref, rtol=2e-6, atol=1e-6)

    # Config 2: dim=64 (< 128) exercises pack=2 lane packing, no interpolation.
    rope2 = RotaryEmbedding(64, theta)
    out2 = jax.block_until_ready(rope2(40, offset=0))
    ref2 = _reference(rope2.inv_freq, 40, 0, None)
    assert out2.shape == (40, 1, 1, 64)
    assert jnp.allclose(out2, ref2, rtol=2e-6, atol=1e-6)

    # Config 3: dim=96 (not a divisor of 128) exercises gcd-based packing (pack=4).
    rope3 = RotaryEmbedding(96, theta)
    out3 = jax.block_until_ready(rope3(33, offset=7))
    ref3 = _reference(rope3.inv_freq, 33, 7, None)
    assert out3.shape == (33, 1, 1, 96)
    assert jnp.allclose(out3, ref3, rtol=2e-6, atol=1e-6)

    print("KERNEL_OK")
</pallas_src>

<mosaic_0001>
module attributes {stable_mosaic.version = 11 : i64} {
  func.func @kernel(%arg0: i32, %arg1: memref<1xi32, #tpu.memory_space<smem>>, %arg2: memref<1x128xf32, #tpu.memory_space<vmem>>, %arg3: memref<256x128xf32, #tpu.memory_space<vmem>>) attributes {dimension_semantics = [#tpu.dimension_semantics<parallel>], iteration_bounds = array<i64: 1>, scalar_prefetch = 1 : i64, scratch_operands = 0 : i64, tpu.core_type = #tpu.core_type<tc>, window_params = [{pipeline_mode = #tpu.pipeline_mode<synchronous>, transform_indices = @transform_0, window_bounds = array<i64: 1, 128>}, {transform_indices = @transform_1, window_bounds = array<i64: 256, 128>}]} {
    %c256_i32 = arith.constant 256 : i32
    %0 = arith.muli %arg0, %c256_i32 : i32
    %c0 = arith.constant 0 : index
    %1 = memref.load %arg1[%c0] : memref<1xi32, #tpu.memory_space<smem>>
    %2 = arith.addi %0, %1 : i32
    %3 = tpu.iota {dimensions = array<i32: 0>} : vector<256x1xi32>
    %c1_i32 = arith.constant 1 : i32
    %4 = vector.broadcast %c1_i32 : i32 to vector<256x1xi32>
    %5 = arith.muli %3, %4 : vector<256x1xi32>
    %6 = vector.broadcast %2 : i32 to vector<256x1xi32>
    %7 = arith.addi %5, %6 : vector<256x1xi32>
    %8 = arith.sitofp %7 : vector<256x1xi32> to vector<256x1xf32>
    %cst = arith.constant 2.500000e-01 : f32
    %9 = vector.broadcast %cst : f32 to vector<256x1xf32>
    %10 = arith.mulf %8, %9 : vector<256x1xf32>
    %c0_0 = arith.constant 0 : index
    %c0_1 = arith.constant 0 : index
    %11 = vector.load %arg2[%c0_0, %c0_1] : memref<1x128xf32, #tpu.memory_space<vmem>>, vector<1x128xf32>
    %12 = vector.broadcast %10 : vector<256x1xf32> to vector<256x128xf32>
    %13 = vector.broadcast %11 : vector<1x128xf32> to vector<256x128xf32>
    %14 = arith.mulf %12, %13 : vector<256x128xf32>
    %c0_2 = arith.constant 0 : index
    %c0_3 = arith.constant 0 : index
    %15 = vector.load %arg3[%c0_2, %c0_3] : memref<256x128xf32, #tpu.memory_space<vmem>>, vector<256x128xf32>
    tpu.vector_store %arg3[%c0_2, %c0_3], %14 {strides = array<i32>} : memref<256x128xf32, #tpu.memory_space<vmem>>, vector<256x128xf32>,
    return
  }
  func.func @transform_0(%arg0: i32, %arg1: memref<1xi32, #tpu.memory_space<smem>>) -> (i32, i32) {
    %c0_i32 = arith.constant 0 : i32
    %c0_i32_0 = arith.constant 0 : i32
    %c0_i32_1 = arith.constant 0 : i32
    return %c0_i32, %c0_i32_0 : i32, i32
  }
  func.func @transform_1(%arg0: i32, %arg1: memref<1xi32, #tpu.memory_space<smem>>) -> (i32, i32) {
    %c0_i32 = arith.constant 0 : i32
    %c0_i32_0 = arith.constant 0 : i32
    return %arg0, %c0_i32 : i32, i32
  }
}

</mosaic_0001>

<bundles_post_ra>
// kernel: tpu_custom_call.1
= control target key start
LH: loop header
LB: loop body
LE: loop exit
PB: predicated region body
PF: predicated region fallthrough
CT: control target
= control target key end

     0   :  { %v14_v0 = vlaneseq  ;;  %s397_s0 = inlined_call_operand.<no memory space> [shape: s32[1], index: 0, kind: input, shape index: {}]   ;;  %s398_s1 = inlined_call_operand.vmem [shape: f32[1,128], index: 1, kind: input, shape index: {}]   ;;  %s399_s2 = inlined_call_operand.hbm [shape: f32[256,128], index: 2, kind: output, shape index: {}]  }
   0x1   :  { %8 = vsyncpa [#allocation5], 0  ;;  %v280_v1 = vstv %s397_s0  ;;  %v299_v15 = vld [vmem:[%s398_s1] ss:$0 sm:$0xff]  ;;  %s259_s1 = smov [#allocation4]  }
   0x2   :  { %v282_v2 = vshrl.u32 %v14_v0, 7  ;;  %s220_s12 = sshll.u32 %s259_s1, 4  ;;  %s221_s12 = int_to_ptr.vmem [resolvable:$true] %s220_s12 }
   0x3   :  { %s235_s13 = scalar_lea.vmem %s221_s12, 4096  ;;  %p240_p1 = scmp.lt.s32.totalorder %s221_s12, %s221_s12 }
   0x4   :  { %v48_v3 = vadd.s32 %v280_v1, %v282_v2  ;;  %v16_v4 = vadd.s32 8, %v282_v2  ;;  %v17_v5 = vadd.s32 16, %v282_v2  ;;  %v18_v6 = vadd.s32 24, %v282_v2  ;;  %p236_p0 = scmp.ne.s32.totalorder %s221_s12, %s235_s13  ;;  %p241_p2 = scmp.lt.s32.totalorder %s235_s13, %s235_s13 }
   0x5   :  { %v19_v7 = vadd.s32 32, %v282_v2  ;;  %v20_v8 = vadd.s32 40, %v282_v2  ;;  %v21_v9 = vadd.s32 48, %v282_v2  ;;  %v22_v10 = vadd.s32 56, %v282_v2 }
   0x6   :  { %v80_v11 = vcvt.s32.f32 %v48_v3  ;;  %v49_v12 = vadd.s32 %v280_v1, %v16_v4  ;;  %v50_v13 = vadd.s32 %v280_v1, %v17_v5  ;;  %v51_v14 = vadd.s32 %v280_v1, %v18_v6  ;;  %p242_p3 = por %p241_p2, %p240_p1 }
   0x7   :  { %v52_v16 = vadd.s32 %v280_v1, %v19_v7  ;;  %v53_v17 = vadd.s32 %v280_v1, %v20_v8  ;;  %v54_v18 = vadd.s32 %v280_v1, %v21_v9  ;;  %v55_v19 = vadd.s32 %v280_v1, %v22_v10 }
   0x8   :  { %v112_v20 = vmul.f32 0.25, %v80_v11  ;;  %v81_v21 = vcvt.s32.f32 %v49_v12  ;;  %v82_v22 = vcvt.s32.f32 %v50_v13  ;;  %v83_v23 = vcvt.s32.f32 %v51_v14  ;;  %p243_p4 = pnand %p242_p3, %p236_p0 }
   0x9   :  { %v84_v24 = vcvt.s32.f32 %v52_v16  ;;  %v85_v25 = vcvt.s32.f32 %v53_v17  ;;  %v86_v26 = vcvt.s32.f32 %v54_v18  ;;  %v87_v27 = vcvt.s32.f32 %v55_v19 }
   0xa   :  { %v151_v28 = vmul.f32 %v299_v15, %v112_v20  ;;  %v113_v29 = vmul.f32 0.25, %v81_v21  ;;  %v114_v30 = vmul.f32 0.25, %v82_v22  ;;  %v115_v31 = vmul.f32 0.25, %v83_v23 }
   0xb   :  { %v116_v32 = vmul.f32 0.25, %v84_v24  ;;  %v117_v33 = vmul.f32 0.25, %v85_v25  ;;  %v118_v34 = vmul.f32 0.25, %v86_v26  ;;  %v119_v35 = vmul.f32 0.25, %v87_v27 }
   0xc   :  { %183 = vst [vmem:[#allocation4] sm:$0xff] %v151_v28  ;;  %v152_v36 = vmul.f32 %v299_v15, %v113_v29  ;;  %v153_v37 = vmul.f32 %v299_v15, %v114_v30  ;;  %v154_v38 = vmul.f32 %v299_v15, %v115_v31  ;;  %v23_v39 = vadd.s32 64, %v282_v2 }
   0xd   :  { %v155_v40 = vmul.f32 %v299_v15, %v116_v32  ;;  %v156_v41 = vmul.f32 %v299_v15, %v117_v33  ;;  %v157_v42 = vmul.f32 %v299_v15, %v118_v34  ;;  %v158_v43 = vmul.f32 %v299_v15, %v119_v35 }
   0xe   :  { %184 = vst [vmem:[#allocation4 + $0x8] sm:$0xff] %v152_v36  ;;  %185 = vst [vmem:[#allocation4 + $0x10] sm:$0xff] %v153_v37  ;;  %v56_v44 = vadd.s32 %v280_v1, %v23_v39  ;;  %v24_v45 = vadd.s32 72, %v282_v2  ;;  %v25_v46 = vadd.s32 80, %v282_v2  ;;  %v26_v47 = vadd.s32 88, %v282_v2 }
   0xf   :  { %186 = vst [vmem:[#allocation4 + $0x18] sm:$0xff] %v154_v38  ;;  %187 = vst [vmem:[#allocation4 + $0x20] sm:$0xff] %v155_v40  ;;  %v27_v48 = vadd.s32 96, %v282_v2  ;;  %v28_v49 = vadd.s32 104, %v282_v2  ;;  %v29_v50 = vadd.s32 112, %v282_v2  ;;  %v30_v51 = vadd.s32 120, %v282_v2 }
  0x10   :  { %188 = vst [vmem:[#allocation4 + $0x28] sm:$0xff] %v156_v41  ;;  %189 = vst [vmem:[#allocation4 + $0x30] sm:$0xff] %v157_v42  ;;  %v88_v52 = vcvt.s32.f32 %v56_v44  ;;  %v57_v53 = vadd.s32 %v280_v1, %v24_v45  ;;  %v58_v54 = vadd.s32 %v280_v1, %v25_v46  ;;  %v59_v55 = vadd.s32 %v280_v1, %v26_v47 }
  0x11   :  { %190 = vst [vmem:[#allocation4 + $0x38] sm:$0xff] %v158_v43  ;;  %v60_v56 = vadd.s32 %v280_v1, %v27_v48  ;;  %v61_v57 = vadd.s32 %v280_v1, %v28_v49  ;;  %v62_v58 = vadd.s32 %v280_v1, %v29_v50  ;;  %v63_v59 = vadd.s32 %v280_v1, %v30_v51 }
  0x12   :  { %v120_v60 = vmul.f32 0.25, %v88_v52  ;;  %v89_v61 = vcvt.s32.f32 %v57_v53  ;;  %v90_v62 = vcvt.s32.f32 %v58_v54  ;;  %v91_v63 = vcvt.s32.f32 %v59_v55 }
  0x13   :  { %v92_v0 = vcvt.s32.f32 %v60_v56  ;;  %v93_v3 = vcvt.s32.f32 %v61_v57  ;;  %v94_v4 = vcvt.s32.f32 %v62_v58  ;;  %v95_v5 = vcvt.s32.f32 %v63_v59 }
  0x14   :  { %v159_v6 = vmul.f32 %v299_v15, %v120_v60  ;;  %v121_v7 = vmul.f32 0.25, %v89_v61  ;;  %v122_v8 = vmul.f32 0.25, %v90_v62  ;;  %v123_v9 = vmul.f32 0.25, %v91_v63 }
  0x15   :  { %v124_v10 = vmul.f32 0.25, %v92_v0  ;;  %v125_v11 = vmul.f32 0.25, %v93_v3  ;;  %v126_v12 = vmul.f32 0.25, %v94_v4  ;;  %v127_v13 = vmul.f32 0.25, %v95_v5 }
  0x16   :  { %191 = vst [vmem:[#allocation4 + $0x40] sm:$0xff] %v159_v6  ;;  %v160_v14 = vmul.f32 %v299_v15, %v121_v7  ;;  %v161_v16 = vmul.f32 %v299_v15, %v122_v8  ;;  %v162_v17 = vmul.f32 %v299_v15, %v123_v9  ;;  %v31_v18 = vadd.s32 128, %v282_v2 }
  0x17   :  { %v163_v19 = vmul.f32 %v299_v15, %v124_v10  ;;  %v164_v20 = vmul.f32 %v299_v15, %v125_v11  ;;  %v165_v21 = vmul.f32 %v299_v15, %v126_v12  ;;  %v166_v22 = vmul.f32 %v299_v15, %v127_v13 }
  0x18   :  { %192 = vst [vmem:[#allocation4 + $0x48] sm:$0xff] %v160_v14  ;;  %193 = vst [vmem:[#allocation4 + $0x50] sm:$0xff] %v161_v16  ;;  %v64_v23 = vadd.s32 %v280_v1, %v31_v18  ;;  %v32_v24 = vadd.s32 136, %v282_v2  ;;  %v33_v25 = vadd.s32 144, %v282_v2  ;;  %v34_v26 = vadd.s32 152, %v282_v2 }
  0x19   :  { %194 = vst [vmem:[#allocation4 + $0x58] sm:$0xff] %v162_v17  ;;  %195 = vst [vmem:[#allocation4 + $0x60] sm:$0xff] %v163_v19  ;;  %v35_v27 = vadd.s32 160, %v282_v2  ;;  %v36_v28 = vadd.s32 168, %v282_v2  ;;  %v37_v29 = vadd.s32 176, %v282_v2  ;;  %v38_v30 = vadd.s32 184, %v282_v2 }
  0x1a   :  { %196 = vst [vmem:[#allocation4 + $0x68] sm:$0xff] %v164_v20  ;;  %197 = vst [vmem:[#allocation4 + $0x70] sm:$0xff] %v165_v21  ;;  %v96_v31 = vcvt.s32.f32 %v64_v23  ;;  %v65_v32 = vadd.s32 %v280_v1, %v32_v24  ;;  %v66_v33 = vadd.s32 %v280_v1, %v33_v25  ;;  %v67_v34 = vadd.s32 %v280_v1, %v34_v26 }
  0x1b   :  { %198 = vst [vmem:[#allocation4 + $0x78] sm:$0xff] %v166_v22  ;;  %v68_v35 = vadd.s32 %v280_v1, %v35_v27  ;;  %v69_v36 = vadd.s32 %v280_v1, %v36_v28  ;;  %v70_v37 = vadd.s32 %v280_v1, %v37_v29  ;;  %v71_v38 = vadd.s32 %v280_v1, %v38_v30 }
  0x1c   :  { %v128_v39 = vmul.f32 0.25, %v96_v31  ;;  %v97_v40 = vcvt.s32.f32 %v65_v32  ;;  %v98_v41 = vcvt.s32.f32 %v66_v33  ;;  %v99_v42 = vcvt.s32.f32 %v67_v34 }
  0x1d   :  { %v100_v43 = vcvt.s32.f32 %v68_v35  ;;  %v101_v44 = vcvt.s32.f32 %v69_v36  ;;  %v102_v45 = vcvt.s32.f32 %v70_v37  ;;  %v103_v46 = vcvt.s32.f32 %v71_v38 }
  0x1e   :  { %v167_v47 = vmul.f32 %v299_v15, %v128_v39  ;;  %v129_v48 = vmul.f32 0.25, %v97_v40  ;;  %v130_v49 = vmul.f32 0.25, %v98_v41  ;;  %v131_v50 = vmul.f32 0.25, %v99_v42 }
  0x1f   :  { %v132_v51 = vmul.f32 0.25, %v100_v43  ;;  %v133_v52 = vmul.f32 0.25, %v101_v44  ;;  %v134_v53 = vmul.f32 0.25, %v102_v45  ;;  %v135_v54 = vmul.f32 0.25, %v103_v46 }
  0x20   :  { %199 = vst [vmem:[#allocation4 + $0x80] sm:$0xff] %v167_v47  ;;  %v168_v55 = vmul.f32 %v299_v15, %v129_v48  ;;  %v169_v56 = vmul.f32 %v299_v15, %v130_v49  ;;  %v170_v57 = vmul.f32 %v299_v15, %v131_v50  ;;  %v39_v58 = vadd.s32 192, %v282_v2 }
  0x21   :  { %v171_v59 = vmul.f32 %v299_v15, %v132_v51  ;;  %v172_v60 = vmul.f32 %v299_v15, %v133_v52  ;;  %v173_v61 = vmul.f32 %v299_v15, %v134_v53  ;;  %v174_v62 = vmul.f32 %v299_v15, %v135_v54 }
  0x22   :  { %200 = vst [vmem:[#allocation4 + $0x88] sm:$0xff] %v168_v55  ;;  %201 = vst [vmem:[#allocation4 + $0x90] sm:$0xff] %v169_v56  ;;  %v72_v63 = vadd.s32 %v280_v1, %v39_v58  ;;  %v40_v0 = vadd.s32 200, %v282_v2  ;;  %v41_v3 = vadd.s32 208, %v282_v2  ;;  %v42_v4 = vadd.s32 216, %v282_v2 }
  0x23   :  { %202 = vst [vmem:[#allocation4 + $0x98] sm:$0xff] %v170_v57  ;;  %203 = vst [vmem:[#allocation4 + $0xa0] sm:$0xff] %v171_v59  ;;  %v43_v5 = vadd.s32 224, %v282_v2  ;;  %v44_v6 = vadd.s32 232, %v282_v2  ;;  %v45_v7 = vadd.s32 240, %v282_v2  ;;  %v46_v8 = vadd.s32 248, %v282_v2 }
  0x24   :  { %204 = vst [vmem:[#allocation4 + $0xa8] sm:$0xff] %v172_v60  ;;  %205 = vst [vmem:[#allocation4 + $0xb0] sm:$0xff] %v173_v61  ;;  %v104_v9 = vcvt.s32.f32 %v72_v63  ;;  %v73_v10 = vadd.s32 %v280_v1, %v40_v0  ;;  %v74_v11 = vadd.s32 %v280_v1, %v41_v3  ;;  %v75_v12 = vadd.s32 %v280_v1, %v42_v4 }
  0x25   :  { %206 = vst [vmem:[#allocation4 + $0xb8] sm:$0xff] %v174_v62  ;;  %v76_v13 = vadd.s32 %v280_v1, %v43_v5  ;;  %v77_v14 = vadd.s32 %v280_v1, %v44_v6  ;;  %v78_v16 = vadd.s32 %v280_v1, %v45_v7  ;;  %v79_v17 = vadd.s32 %v280_v1, %v46_v8 }
  0x26   :  { %v136_v18 = vmul.f32 0.25, %v104_v9  ;;  %v105_v19 = vcvt.s32.f32 %v73_v10  ;;  %v106_v20 = vcvt.s32.f32 %v74_v11  ;;  %v107_v21 = vcvt.s32.f32 %v75_v12 }
  0x27   :  { %v108_v2 = vcvt.s32.f32 %v76_v13  ;;  %v109_v22 = vcvt.s32.f32 %v77_v14  ;;  %v110_v23 = vcvt.s32.f32 %v78_v16  ;;  %v111_v24 = vcvt.s32.f32 %v79_v17 }
  0x28   :  { %v175_v25 = vmul.f32 %v299_v15, %v136_v18  ;;  %v137_v26 = vmul.f32 0.25, %v105_v19  ;;  %v138_v27 = vmul.f32 0.25, %v106_v20  ;;  %v139_v28 = vmul.f32 0.25, %v107_v21 }
  0x29   :  { %v140_v29 = vmul.f32 0.25, %v108_v2  ;;  %v141_v30 = vmul.f32 0.25, %v109_v22  ;;  %v142_v31 = vmul.f32 0.25, %v110_v23  ;;  %v143_v32 = vmul.f32 0.25, %v111_v24 }
  0x2a   :  { %207 = vst [vmem:[#allocation4 + $0xc0] sm:$0xff] %v175_v25  ;;  %v176_v1 = vmul.f32 %v299_v15, %v137_v26  ;;  %v177_v33 = vmul.f32 %v299_v15, %v138_v27  ;;  %v178_v34 = vmul.f32 %v299_v15, %v139_v28 }
  0x2b   :  { %v179_v35 = vmul.f32 %v299_v15, %v140_v29  ;;  %v180_v36 = vmul.f32 %v299_v15, %v141_v30  ;;  %v181_v37 = vmul.f32 %v299_v15, %v142_v31  ;;  %v182_v38 = vmul.f32 %v299_v15, %v143_v32 }
  0x2c   :  { %208 = vst [vmem:[#allocation4 + $0xc8] sm:$0xff] %v176_v1  ;;  %209 = vst [vmem:[#allocation4 + $0xd0] sm:$0xff] %v177_v33 }
  0x2d   :  { %210 = vst [vmem:[#allocation4 + $0xd8] sm:$0xff] %v178_v34  ;;  %211 = vst [vmem:[#allocation4 + $0xe0] sm:$0xff] %v179_v35 }
  0x2e   :  { %212 = vst [vmem:[#allocation4 + $0xe8] sm:$0xff] %v180_v36  ;;  %213 = vst [vmem:[#allocation4 + $0xf0] sm:$0xff] %v181_v37 }
  0x2f   :  { %214 = vst [vmem:[#allocation4 + $0xf8] sm:$0xff] %v182_v38 }
  0x30   :  { %246 = shalt.err (!%p243_p4)
}
  0x31   :  { %s247_s16 = scalar_lea.hbm %s399_s2, 4096 }
  0x32   :  { %p248_p5 = scmp.ne.s32.totalorder %s399_s2, %s247_s16  ;;  %p251_p6 = scmp.lt.u32.totalorder %s247_s16, %s399_s2 }
  0x34   :  { %p253_p7 = pnand %p251_p6, %p248_p5 }
  0x36   :  { %256 = shalt.err (!%p253_p7)
}
  0x37   :  { %s260_s21 = smov 128   ;;  %s261_s22 = smov 8  }
  0x38   :  { %226 = dma.vmem_to_hbm [thread:$0]  %s221_s12, 4096, %s399_s2, [#allocation5], %s260_s21, %s260_s21, %s261_s22  }
  0x39   :  { %257 = dma.done.wait [#allocation5], 4096  }
  0x3a   :  { %258 = vsyncadd [#allocation5], 4294963200 }
  0x3b   :  { %230 = vsyncpa [#allocation5], 1 }

</bundles_post_ra>
